<compile_context>
chip_gen: v6e
topology: v6e:2x2x1
jax: 0.10.0
libtpu: 0.0.40
codegen_flags: <defaults>
</compile_context>

<pallas_src>
import functools

import jax
import jax.numpy as jnp
from jax.experimental import pallas as pl
from jax.experimental.pallas import tpu as pltpu


def _ca_kernel(x_ref, w1t_ref, w2t_ref, o_ref, *, inv_hw):
    """Channel attention for one (Nb, C, HWp) block.

    inv_hw is 1 / (true H*W before lane padding) so zero-padded lanes do not
    perturb the average pool.
    """
    x = x_ref[...]                                            # (Nb, C, HWp), input dtype

    # AdaptiveAvgPool2d(1): f32 accumulation without materializing an f32 copy
    # of the whole slab (matters for bf16 inputs: halves the VMEM working set).
    pooled = jnp.sum(x, axis=-1, dtype=jnp.float32) * inv_hw  # (Nb, C)

    # Two 1x1 convs as row-vector matmuls (weights pre-transposed in wrapper).
    w1t = w1t_ref[...].astype(jnp.float32)                    # (C, Cr)
    w2t = w2t_ref[...].astype(jnp.float32)                    # (Cr, C)
    h = jnp.dot(pooled, w1t, preferred_element_type=jnp.float32)   # (Nb, Cr)
    h = jnp.where(h >= 0, h, 0.2 * h)                         # LeakyReLU(0.2)
    z = jnp.dot(h, w2t, preferred_element_type=jnp.float32)   # (Nb, C)

    # Sigmoid: exp goes to the (otherwise idle) EUP; exact reciprocal on a
    # tiny (Nb, C) tensor.
    scale = 1.0 / (1.0 + jnp.exp(-z))                         # (Nb, C) f32

    # Broadcast rescale in the input dtype (bf16 stays bf16 on v6e/v7x).
    scale = scale.astype(x.dtype)[:, :, None]                 # (Nb, C, 1)
    o_ref[...] = (x * scale).astype(o_ref.dtype)


def _largest_divisor_at_most(n, cap):
    best = 1
    for d in range(1, n + 1):
        if n % d == 0 and d <= cap:
            best = d
    return best


def ca_layer(x_nchw, w1, w2, *, per_buffer_budget_bytes=6 << 20):
    """CALayer forward.  x_nchw: (N, C, H, W); w1: (C//r, C); w2: (C, C//r)."""
    N, C, H, W = x_nchw.shape
    Cr = w1.shape[0]
    HW = H * W
    # Lane-dense spatial axis: pad HW up to a multiple of 128 so the output
    # stores are unmasked vst.
    HWp = ((HW + 127) // 128) * 128

    x = x_nchw.reshape(N, C, HW)
    if HWp != HW:
        x = jnp.pad(x, ((0, 0), (0, 0), (0, HWp - HW)))

    itemsize = jnp.dtype(x.dtype).itemsize
    per_elem_bytes = C * HWp * itemsize
    # Fold batch elements into one block: the largest divisor of N whose block
    # stays under the per-buffer budget.  Resident footprint is ~4x a block
    # (input + output, each double-buffered).  If a single (C, HW) slab
    # already exceeds the budget we still run with Nb = 1.
    # TODO(synk): HW-tiled two-pass mean (partial-sum accumulator, then a
    # scale-apply sweep) for slabs that exceed the VMEM budget on v7x (64 MiB).
    nb_cap = max(1, per_buffer_budget_bytes // max(per_elem_bytes, 1))
    Nb = _largest_divisor_at_most(N, nb_cap)
    grid = (N // Nb,)

    block_bytes = Nb * per_elem_bytes
    # Explicit VMEM budget: enough for 4x block + weights + headroom, never
    # above v7x's 64 MiB physical VMEM.
    vmem_limit = int(min(64 << 20, max(32 << 20, 4 * block_bytes + (8 << 20))))

    # Pre-transpose the 1x1-conv weights once so the in-kernel matmuls are
    # row-vector shaped (no in-kernel XLU transpose).
    w1t = jnp.transpose(w1)   # (C, Cr)
    w2t = jnp.transpose(w2)   # (Cr, C)

    kernel = functools.partial(_ca_kernel, inv_hw=1.0 / float(HW))

    out = pl.pallas_call(
        kernel,
        out_shape=jax.ShapeDtypeStruct((N, C, HWp), x.dtype),
        grid_spec=pltpu.PrefetchScalarGridSpec(
            num_scalar_prefetch=0,
            grid=grid,
            in_specs=[
                pl.BlockSpec((Nb, C, HWp), lambda n: (n, 0, 0)),
                pl.BlockSpec((C, Cr), lambda n: (0, 0)),
                pl.BlockSpec((Cr, C), lambda n: (0, 0)),
            ],
            out_specs=pl.BlockSpec((Nb, C, HWp), lambda n: (n, 0, 0)),
        ),
        compiler_params=pltpu.CompilerParams(
            dimension_semantics=("parallel",),
            vmem_limit_bytes=vmem_limit,
        ),
    )(x, w1t, w2t)

    if HWp != HW:
        out = out[:, :, :HW]
    return out.reshape(N, C, H, W)


def ca_layer_ref(x, w1, w2):
    """Pure-JAX reference matching the PyTorch forward."""
    y = jnp.mean(x, axis=(2, 3), keepdims=True)             # (N, C, 1, 1)
    yv = y[:, :, 0, 0]                                       # (N, C)
    h = yv @ w1.T                                            # (N, C//r)
    h = jnp.where(h >= 0, h, 0.2 * h)
    s = h @ w2.T                                             # (N, C)
    scale = jax.nn.sigmoid(s)[:, :, None, None]              # (N, C, 1, 1)
    return x * scale


if __name__ == "__main__":
    # Module hyperparameters (channel must be divisible by reduction).
    N, C, H, W = 2, 32, 16, 16
    reduction = 8
    Cr = C // reduction

    key = jax.random.PRNGKey(0)
    kx, k1, k2 = jax.random.split(key, 3)

    x = jax.random.normal(kx, (N, C, H, W), dtype=jnp.float32)
    # Deterministic synthetic weights for the two 1x1 convs (bias=False);
    # shapes match nn.Conv2d(C, C//r, 1) and nn.Conv2d(C//r, C, 1) kernels
    # with the trailing (1, 1) spatial dims squeezed away.
    w1 = jax.random.normal(k1, (Cr, C), dtype=jnp.float32) * (1.0 / (C ** 0.5))
    w2 = jax.random.normal(k2, (C, Cr), dtype=jnp.float32) * (1.0 / (Cr ** 0.5))

    out = ca_layer(x, w1, w2)
    out = jax.block_until_ready(out)

    ref = ca_layer_ref(x, w1, w2)
    assert out.shape == (N, C, H, W)
    assert jnp.max(jnp.abs(out - ref)) < 1e-4

    print("KERNEL_OK")
</pallas_src>

<mosaic_0001>
module attributes {stable_mosaic.version = 11 : i64} {
  func.func @_ca_kernel(%arg0: i32, %arg1: memref<2x32x256xf32, #tpu.memory_space<vmem>>, %arg2: memref<32x4xf32, #tpu.memory_space<vmem>>, %arg3: memref<4x32xf32, #tpu.memory_space<vmem>>, %arg4: memref<2x32x256xf32, #tpu.memory_space<vmem>>) attributes {dimension_semantics = [#tpu.dimension_semantics<parallel>], iteration_bounds = array<i64: 1>, scalar_prefetch = 0 : i64, scratch_operands = 0 : i64, tpu.core_type = #tpu.core_type<tc>, window_params = [{transform_indices = @transform_0, window_bounds = array<i64: 2, 32, 256>}, {pipeline_mode = #tpu.pipeline_mode<synchronous>, transform_indices = @transform_1, window_bounds = array<i64: 32, 4>}, {pipeline_mode = #tpu.pipeline_mode<synchronous>, transform_indices = @transform_2, window_bounds = array<i64: 4, 32>}, {transform_indices = @transform_3, window_bounds = array<i64: 2, 32, 256>}]} {
    %c0 = arith.constant 0 : index
    %c0_0 = arith.constant 0 : index
    %c0_1 = arith.constant 0 : index
    %0 = vector.load %arg1[%c0, %c0_0, %c0_1] : memref<2x32x256xf32, #tpu.memory_space<vmem>>, vector<2x32x256xf32>
    %cst = arith.constant dense<0.000000e+00> : vector<2x32xf32>
    %1 = vector.multi_reduction <add>, %0, %cst [2] : vector<2x32x256xf32> to vector<2x32xf32>
    %cst_2 = arith.constant 3.906250e-03 : f32
    %2 = vector.broadcast %cst_2 : f32 to vector<2x32xf32>
    %3 = arith.mulf %1, %2 : vector<2x32xf32>
    %c0_3 = arith.constant 0 : index
    %c0_4 = arith.constant 0 : index
    %4 = vector.load %arg2[%c0_3, %c0_4] : memref<32x4xf32, #tpu.memory_space<vmem>>, vector<32x4xf32>
    %c0_5 = arith.constant 0 : index
    %c0_6 = arith.constant 0 : index
    %5 = vector.load %arg3[%c0_5, %c0_6] : memref<4x32xf32, #tpu.memory_space<vmem>>, vector<4x32xf32>
    %cst_7 = arith.constant dense<0.000000e+00> : vector<2x4xf32>
    %6 = tpu.matmul %3, %4, %cst_7 {dimension_numbers = #tpu.dot_dimension_numbers<[1], [0], [0], [1], [0, 0, 1, 1], [], []>} : vector<2x32xf32>, vector<32x4xf32>, vector<2x4xf32> -> vector<2x4xf32>
    %cst_8 = arith.constant 0.000000e+00 : f32
    %7 = vector.broadcast %cst_8 : f32 to vector<2x4xf32>
    %8 = arith.cmpf oge, %6, %7 : vector<2x4xf32>
    %cst_9 = arith.constant 2.000000e-01 : f32
    %9 = vector.broadcast %cst_9 : f32 to vector<2x4xf32>
    %10 = arith.mulf %9, %6 : vector<2x4xf32>
    %11 = arith.select %8, %6, %10 : vector<2x4xi1>, vector<2x4xf32>
    %cst_10 = arith.constant dense<0.000000e+00> : vector<2x32xf32>
    %12 = tpu.matmul %11, %5, %cst_10 {dimension_numbers = #tpu.dot_dimension_numbers<[1], [0], [0], [1], [0, 0, 1, 1], [], []>} : vector<2x4xf32>, vector<4x32xf32>, vector<2x32xf32> -> vector<2x32xf32>
    %cst_11 = arith.constant 0.000000e+00 : f32
    %13 = vector.broadcast %cst_11 : f32 to vector<2x32xf32>
    %14 = arith.subf %13, %12 : vector<2x32xf32>
    %15 = math.exp %14 : vector<2x32xf32>
    %cst_12 = arith.constant 1.000000e+00 : f32
    %16 = vector.broadcast %cst_12 : f32 to vector<2x32xf32>
    %17 = arith.addf %16, %15 : vector<2x32xf32>
    %cst_13 = arith.constant 1.000000e+00 : f32
    %18 = vector.broadcast %cst_13 : f32 to vector<2x32xf32>
    %19 = arith.divf %18, %17 : vector<2x32xf32>
    %20 = vector.shape_cast %19 : vector<2x32xf32> to vector<2x32x1xf32>
    %21 = vector.broadcast %20 : vector<2x32x1xf32> to vector<2x32x256xf32>
    %22 = arith.mulf %0, %21 : vector<2x32x256xf32>
    %c0_14 = arith.constant 0 : index
    %c0_15 = arith.constant 0 : index
    %c0_16 = arith.constant 0 : index
    %23 = vector.load %arg4[%c0_14, %c0_15, %c0_16] : memref<2x32x256xf32, #tpu.memory_space<vmem>>, vector<2x32x256xf32>
    tpu.vector_store %arg4[%c0_14, %c0_15, %c0_16], %22 {strides = array<i32>} : memref<2x32x256xf32, #tpu.memory_space<vmem>>, vector<2x32x256xf32>,
    return
  }
  func.func @transform_0(%arg0: i32) -> (i32, i32, i32) {
    %c0_i32 = arith.constant 0 : i32
    %c0_i32_0 = arith.constant 0 : i32
    %c0_i32_1 = arith.constant 0 : i32
    return %arg0, %c0_i32, %c0_i32_0 : i32, i32, i32
  }
  func.func @transform_1(%arg0: i32) -> (i32, i32) {
    %c0_i32 = arith.constant 0 : i32
    %c0_i32_0 = arith.constant 0 : i32
    %c0_i32_1 = arith.constant 0 : i32
    return %c0_i32, %c0_i32_0 : i32, i32
  }
  func.func @transform_2(%arg0: i32) -> (i32, i32) {
    %c0_i32 = arith.constant 0 : i32
    %c0_i32_0 = arith.constant 0 : i32
    %c0_i32_1 = arith.constant 0 : i32
    return %c0_i32, %c0_i32_0 : i32, i32
  }
  func.func @transform_3(%arg0: i32) -> (i32, i32, i32) {
    %c0_i32 = arith.constant 0 : i32
    %c0_i32_0 = arith.constant 0 : i32
    %c0_i32_1 = arith.constant 0 : i32
    return %arg0, %c0_i32, %c0_i32_0 : i32, i32, i32
  }
}

</mosaic_0001>

<bundles_post_ra>
// kernel: tpu_custom_call.1
= control target key start
LH: loop header
LB: loop body
LE: loop exit
PB: predicated region body
PF: predicated region fallthrough
CT: control target
= control target key end

     0   :  { %8 = vsyncpa [#allocation3], 0  ;;  %s590_s0 = inlined_call_operand.hbm [shape: f32[2,32,256], index: 0, kind: input, shape index: {}]   ;;  %s591_s1 = inlined_call_operand.vmem [shape: f32[32,4], index: 1, kind: input, shape index: {}]   ;;  %s592_s2 = inlined_call_operand.vmem [shape: f32[4,32], index: 2, kind: input, shape index: {}]   ;;  %s593_s3 = inlined_call_operand.hbm [shape: f32[2,32,256], index: 3, kind: output, shape index: {}]  }
   0x1   :  { %9 = vsyncpa [#allocation4], 0  ;;  %s465_s12 = smov [#allocation2]  }
   0x2   :  { %s15_s13 = sshll.u32 %s465_s12, 4  ;;  %s16_s13 = int_to_ptr.vmem [resolvable:$true] %s15_s13 }
   0x3   :  { %s429_s14 = scalar_lea.vmem %s16_s13, 2048  ;;  %p434_p1 = scmp.lt.s32.totalorder %s16_s13, %s16_s13 }
   0x4   :  { %p430_p0 = scmp.ne.s32.totalorder %s16_s13, %s429_s14  ;;  %p435_p2 = scmp.lt.s32.totalorder %s429_s14, %s429_s14 }
   0x6   :  { %p436_p3 = por %p435_p2, %p434_p1 }
   0x8   :  { %p437_p4 = pnand %p436_p3, %p430_p0 }
   0xa   :  { %440 = shalt.err (!%p437_p4)
}
   0xb   :  { %s466_s15 = smov 256   ;;  %s467_s16 = smov 16  }
   0xc   :  { %21 = dma.hbm_to_vmem [thread:$0]  %s590_s0, 2048, %s16_s13, [#allocation3], %s466_s15, %s466_s15, %s467_s16  }
   0xd   :  { %461 = dma.done.wait [#allocation3], 2048  }
   0xe   :  { %462 = vsyncadd [#allocation3], 4294965248  ;;  %v497_v0 = vld [vmem:[#allocation2 + $0x40] sm:$0xff]  ;;  %v499_v1 = vld [vmem:[#allocation2 + $0x48] sm:$0xff]  ;;  %v468_v24 = vmov 0.0   ;;  %vm469_vm0 = vmmov 0   ;;  %v90_v29 = vlaneseq }
   0xf   :  { %v501_v2 = vld [vmem:[#allocation2] sm:$0xff]  ;;  %v57_v3 = vadd.f32 %v499_v1, %v497_v0  ;;  %v505_v4 = vld [vmem:[#allocation2 + $0x8] sm:$0xff]  ;;  %v507_v5 = vld [vmem:[#allocation2 + $0x50] sm:$0xff]  ;;  %395 = vmatprep.subr.mxu0 %v468_v24  ;;  %406 = vmatprep.subr.mxu1 %v468_v24  ;;  %vm101_vm1 = vcmask 130112   ;;  %vm108_vm2 = vcmask 195712   ;;  %vm115_vm3 = vcmask 261312  }
  0x10   :  { %v509_v6 = vld [vmem:[#allocation2 + $0x58] sm:$0xff]  ;;  %v45_v7 = vadd.f32 %v505_v4, %v501_v2  ;;  %v513_v8 = vld [vmem:[#allocation2 + $0x10] sm:$0xff]  ;;  %v521_v12 = vld [vmem:[#allocation2 + $0x60] sm:$0xff]  ;;  %403 = vmatprep.mubr.msk.f32.mxu0 %vm469_vm0, %v468_v24  ;;  %408 = vmatprep.mubr.msk.f32.mxu1 %vm469_vm0, %v468_v24  ;;  %v91_v31 = vand.u32 127, %v90_v29  ;;  %v557_v36 = vshrl.u32 %v90_v29, 7  ;;  %vm136_vm4 = vcmask 1041409  }
  0x11   :  { %v515_v9 = vld [vmem:[#allocation2 + $0x18] sm:$0xff]  ;;  %58 = vadd.xlane.f32.xlu1 %v57_v3  ;;  %v60_v10 = vadd.f32 %v509_v6, %v507_v5  ;;  %v523_v13 = vld [vmem:[#allocation2 + $0x68] sm:$0xff]  ;;  %v525_v14 = vld [vmem:[#allocation2 + $0x20] sm:$0xff]  ;;  %vm138_vm5 = vcmask 261120   ;;  %vm218_vm6 = vcmask 1043456   ;;  %vm214_vm8 = vcmask 31744  }
  0x12   :  { %46 = vadd.xlane.f32.xlu0 %v45_v7  ;;  %v48_v11 = vadd.f32 %v515_v9, %v513_v8  ;;  %v527_v15 = vld [vmem:[#allocation2 + $0x28] sm:$0xff]  ;;  %v63_v16 = vadd.f32 %v523_v13, %v521_v12  ;;  %v533_v18 = vld [vmem:[#allocation2 + $0x70] sm:$0xff]  ;;  %v535_v19 = vld [vmem:[#allocation2 + $0x78] sm:$0xff]  ;;  %v96_v33 = vadd.s32 4294967288, %v91_v31  ;;  %v103_v35 = vadd.s32 4294967280, %v91_v31 }
  0x13   :  { %v51_v17 = vadd.f32 %v527_v15, %v525_v14  ;;  %v537_v20 = vld [vmem:[#allocation2 + $0x30] sm:$0xff]  ;;  %v539_v21 = vld [vmem:[#allocation2 + $0x38] sm:$0xff]  ;;  %v66_v22 = vadd.f32 %v535_v19, %v533_v18  ;;  %v78_v27 = vld [vmem:[%s591_s1 + $0x8] sm:$0xff]  ;;  %v110_v40 = vadd.s32 4294967272, %v91_v31  ;;  %v94_v44 = vsub.s32 %v91_v31, %v557_v36 }
  0x14   :  { %v54_v23 = vadd.f32 %v539_v21, %v537_v20  ;;  %v80_v25 = vld [vmem:[%s591_s1 + $0x18] sm:$0xff]  ;;  %v79_v26 = vld [vmem:[%s591_s1 + $0x10] sm:$0xff]  ;;  %v77_v28 = vld [vmem:[%s591_s1] sm:$0xff]  ;;  %v99_v38 = vsub.s32 %v96_v33, %v557_v36  ;;  %v106_v42 = vsub.s32 %v103_v35, %v557_v36  ;;  %v300_v33 = vsub.s32 0, %v557_v36 }
  0x15   :  { %61 = vadd.xlane.f32.xlu1 %v60_v10  ;;  %396 = vmatpush3.msra.mxu0 %v80_v25  ;;  %v113_v51 = vsub.s32 %v110_v40, %v557_v36 }
  0x16   :  { %49 = vadd.xlane.f32.xlu0 %v48_v11  ;;  %397 = vmatprep.subr.mxu0 %v468_v24 }
  0x17   :  { %398 = vmatpush3.msra.mxu0 %v79_v26 }
  0x18   :  { %399 = vmatprep.subr.mxu0 %v468_v24 }
  0x19   :  { %64 = vadd.xlane.f32.xlu1 %v63_v16  ;;  %400 = vmatpush3.msra.mxu0 %v78_v27 }
  0x1a   :  { %52 = vadd.xlane.f32.xlu0 %v51_v17  ;;  %401 = vmatprep.subr.mxu0 %v468_v24 }
  0x1b   :  { %402 = vmatpush3.msra.mxu0 %v77_v28 }
  0x1d   :  { %67 = vadd.xlane.f32.xlu1 %v66_v22  ;;  %v81_v22 = vld [vmem:[%s592_s2] sm:$0xf]  ;;  %s470_s2 = smov [#allocation5]  }
  0x1e   :  { %55 = vadd.xlane.f32.xlu0 %v54_v23  ;;  %407 = vmatpush3.msk.msra.mxu1 %vm218_vm6, %v81_v22  ;;  %s373_s27 = sshll.u32 %s470_s2, 4  ;;  %s374_s27 = int_to_ptr.vmem [resolvable:$true] %s373_s27 }
  0x1f   :  { %s441_s28 = scalar_lea.vmem %s374_s27, 2048  ;;  %p446_p6 = scmp.lt.s32.totalorder %s374_s27, %s374_s27 }
  0x20   :  { %p442_p5 = scmp.ne.s32.totalorder %s374_s27, %s441_s28  ;;  %p447_p7 = scmp.lt.s32.totalorder %s441_s28, %s441_s28 }
  0x22   :  { %p448_p8 = por %p447_p7, %p446_p6 }
  0x24   :  { %p449_p9 = pnand %p448_p8, %p442_p5 }
  0x9a   :  { %v59_v30 = vpop.xlane.xlu1 %58 }
  0x9b   :  { %v47_v32 = vpop.xlane.xlu0 %46  ;;  %v73_v45 = vmul.f32 0.00390625, %v59_v30 }
  0x9c   :  { %v69_v48 = vmul.f32 0.00390625, %v47_v32 }
  0x9d   :  { %v120_v55 = vrot.slane %v73_v45, %v94_v44 }
  0x9e   :  { %v62_v34 = vpop.xlane.xlu1 %61  ;;  %v95_v59 = vrot.slane %v69_v48, %v94_v44 }
  0x9f   :  { %v50_v37 = vpop.xlane.xlu0 %49  ;;  %v74_v39 = vmul.f32 0.00390625, %v62_v34 }
  0xa0   :  { %v70_v41 = vmul.f32 0.00390625, %v50_v37  ;;  %v319_v37 = vsub.s32 1, %v557_v36 }
  0xa1   :  { %v124_v50 = vrot.slane %v74_v39, %v99_v38 }
  0xa2   :  { %v65_v43 = vpop.xlane.xlu1 %64  ;;  %v100_v52 = vrot.slane %v70_v41, %v99_v38 }
  0xa3   :  { %v75_v46 = vmul.f32 0.00390625, %v65_v43  ;;  %v53_v47 = vpop.xlane.xlu0 %52  ;;  %v125_v61 = vsel %vm101_vm1, %v124_v50, %v120_v55 }
  0xa4   :  { %v71_v49 = vmul.f32 0.00390625, %v53_v47  ;;  %v102_v63 = vsel %vm101_vm1, %v100_v52, %v95_v59 }
  0xa5   :  { %v129_v53 = vrot.slane %v75_v46, %v106_v42 }
  0xa6   :  { %v68_v54 = vpop.xlane.xlu1 %67  ;;  %v107_v56 = vrot.slane %v71_v49, %v106_v42 }
  0xa7   :  { %v76_v57 = vmul.f32 0.00390625, %v68_v54  ;;  %v56_v58 = vpop.xlane.xlu0 %55  ;;  %v130_v3 = vsel %vm108_vm2, %v129_v53, %v125_v61 }
  0xa8   :  { %v72_v60 = vmul.f32 0.00390625, %v56_v58  ;;  %v109_v10 = vsel %vm108_vm2, %v107_v56, %v102_v63 }
  0xa9   :  { %v134_v62 = vrot.slane %v76_v57, %v113_v51 }
  0xaa   :  { %v114_v7 = vrot.slane %v72_v60, %v113_v51 }
  0xab   :  { %v135_v11 = vsel %vm115_vm3, %v134_v62, %v130_v3 }
  0xac   :  { %v116_v16 = vsel %vm115_vm3, %v114_v7, %v109_v10 }
  0xad   :  { %v137_v17 = vsel %vm136_vm4, %v135_v11, %v116_v16 }
  0xae   :  { %404 = vmatmul.mubr.msk.f32.vlgmr.msra.gmra.mxu0 %vm138_vm5, %v137_v17 }
 0x16e   :  { %v207_v23 = vpop.f32.mrf.mxu0 }
 0x16f   :  { %vm211_vm7 = vcmp.ge.f32.partialorder %v207_v23, 0.0  ;;  %v212_v24 = vmul.f32 0.2, %v207_v23 }
 0x170   :  { %v405_v25 = vpop.f32.mrf.mxu0 }
 0x171   :  { %v213_v26 = vsel %vm211_vm7, %v207_v23, %v212_v24 }
 0x172   :  { %409 = vmatmul.mubr.msk.f32.vlgmr.msra.gmra.mxu1 %vm214_vm8, %v213_v26 }
 0x232   :  { %v288_v27 = vpop.f32.mrf.mxu1 }
 0x233   :  { %v292_v28 = vsub.f32 0.0, %v288_v27 }
 0x234   :  { %v410_v29 = vpop.f32.mrf.mxu1 }
 0x235   :  { %v293_v30 = vmul.f32 1.442695, %v292_v28 }
 0x237   :  { %417 = vpow2.f32 %v293_v30 }
 0x244   :  { %v418_v31 = vpop.eup %417 }
 0x245   :  { %v295_v32 = vadd.f32 1.0, %v418_v31 }
 0x247   :  { %419 = vrcp.f32 %v295_v32 }
 0x254   :  { %v420_v34 = vpop.eup %419 }
 0x255   :  { %v301_v35 = vrot.slane %v420_v34, %v300_v33  ;;  %v320_v38 = vrot.slane %v420_v34, %v319_v37 }
 0x257   :  { %307 = vbcast.lane.b32.xlu1 %v301_v35, 264  ;;  %303 = vbcast.lane.b32.xlu0 %v301_v35, 256 }
 0x25b   :  { %311 = vbcast.lane.b32.xlu1 %v301_v35, 272  ;;  %322 = vbcast.lane.b32.xlu0 %v320_v38, 256 }
 0x25f   :  { %315 = vbcast.lane.b32.xlu1 %v301_v35, 280  ;;  %330 = vbcast.lane.b32.xlu0 %v320_v38, 272 }
 0x263   :  { %326 = vbcast.lane.b32.xlu1 %v320_v38, 264 }
 0x267   :  { %334 = vbcast.lane.b32.xlu1 %v320_v38, 280 }
 0x2c9   :  { %v308_v39 = vpop.permute.xlu1 %307  ;;  %v304_v40 = vpop.permute.xlu0 %303 }
 0x2ca   :  { %v338_v41 = vmul.f32 %v308_v39, %v513_v8  ;;  %v339_v42 = vmul.f32 %v308_v39, %v515_v9  ;;  %v336_v43 = vmul.f32 %v304_v40, %v501_v2  ;;  %v337_v44 = vmul.f32 %v304_v40, %v505_v4 }
 0x2cc   :  { %354 = vst [vmem:[#allocation5 + $0x10] sm:$0xff] %v338_v41  ;;  %355 = vst [vmem:[#allocation5 + $0x18] sm:$0xff] %v339_v42 }
 0x2cd   :  { %352 = vst [vmem:[#allocation5] sm:$0xff] %v336_v43  ;;  %353 = vst [vmem:[#allocation5 + $0x8] sm:$0xff] %v337_v44  ;;  %v312_v36 = vpop.permute.xlu1 %311  ;;  %v323_v45 = vpop.permute.xlu0 %322 }
 0x2ce   :  { %v340_v46 = vmul.f32 %v312_v36, %v525_v14  ;;  %v341_v47 = vmul.f32 %v312_v36, %v527_v15  ;;  %v344_v48 = vmul.f32 %v323_v45, %v497_v0  ;;  %v345_v8 = vmul.f32 %v323_v45, %v499_v1 }
 0x2d0   :  { %356 = vst [vmem:[#allocation5 + $0x20] sm:$0xff] %v340_v46  ;;  %357 = vst [vmem:[#allocation5 + $0x28] sm:$0xff] %v341_v47 }
 0x2d1   :  { %360 = vst [vmem:[#allocation5 + $0x40] sm:$0xff] %v344_v48  ;;  %361 = vst [vmem:[#allocation5 + $0x48] sm:$0xff] %v345_v8  ;;  %v316_v2 = vpop.permute.xlu1 %315  ;;  %v331_v4 = vpop.permute.xlu0 %330 }
 0x2d2   :  { %v342_v9 = vmul.f32 %v316_v2, %v537_v20  ;;  %v343_v49 = vmul.f32 %v316_v2, %v539_v21  ;;  %v348_v50 = vmul.f32 %v331_v4, %v521_v12  ;;  %v349_v14 = vmul.f32 %v331_v4, %v523_v13 }
 0x2d4   :  { %358 = vst [vmem:[#allocation5 + $0x30] sm:$0xff] %v342_v9  ;;  %359 = vst [vmem:[#allocation5 + $0x38] sm:$0xff] %v343_v49 }
 0x2d5   :  { %364 = vst [vmem:[#allocation5 + $0x60] sm:$0xff] %v348_v50  ;;  %365 = vst [vmem:[#allocation5 + $0x68] sm:$0xff] %v349_v14  ;;  %v327_v0 = vpop.permute.xlu1 %326 }
 0x2d6   :  { %v346_v1 = vmul.f32 %v327_v0, %v507_v5  ;;  %v347_v15 = vmul.f32 %v327_v0, %v509_v6 }
 0x2d8   :  { %362 = vst [vmem:[#allocation5 + $0x50] sm:$0xff] %v346_v1  ;;  %363 = vst [vmem:[#allocation5 + $0x58] sm:$0xff] %v347_v15 }
 0x2d9   :  { %v335_v20 = vpop.permute.xlu1 %334 }
 0x2da   :  { %v350_v21 = vmul.f32 %v335_v20, %v533_v18  ;;  %v351_v12 = vmul.f32 %v335_v20, %v535_v19 }
 0x2dc   :  { %366 = vst [vmem:[#allocation5 + $0x70] sm:$0xff] %v350_v21  ;;  %367 = vst [vmem:[#allocation5 + $0x78] sm:$0xff] %v351_v12 }
 0x2dd   :  { %452 = shalt.err (!%p449_p9)
}
 0x2de   :  { %379 = dma.vmem_to_hbm [thread:$0]  %s374_s27, 2048, %s593_s3, [#allocation4], %s466_s15, %s466_s15, %s467_s16  }
 0x2df   :  { %463 = dma.done.wait [#allocation4], 2048  }
 0x2e0   :  { %464 = vsyncadd [#allocation4], 4294965248 }
 0x2e1   :  { %383 = vsyncpa [#allocation3], 1 }
 0x2e2   :  { %384 = vsyncpa [#allocation4], 1 }

</bundles_post_ra>
